<compile_context>
chip_gen: v6e
topology: v6e:2x2x1
jax: 0.10.0
libtpu: 0.0.40
codegen_flags: <defaults>
</compile_context>

<pallas_src>
import jax
import jax.numpy as jnp
from jax.experimental import pallas as pl
from jax.experimental.pallas import tpu as pltpu


def _round_up(n, m):
    return ((n + m - 1) // m) * m


def lenet_expert_kernel(x_ref, w1_ref, b1_ref, w2_ref, b2_ref, w3_ref, b3_ref,
                        o_ref):
    # fc1 + relu   (dropout1 = identity in eval mode)
    h1 = jnp.dot(x_ref[...], w1_ref[...], preferred_element_type=jnp.float32)
    h1 = jnp.maximum(h1 + b1_ref[...], 0.0)
    # fc2 + relu   (dropout2 = identity in eval mode)
    h2 = jnp.dot(h1.astype(w2_ref.dtype), w2_ref[...],
                 preferred_element_type=jnp.float32)
    h2 = jnp.maximum(h2 + b2_ref[...], 0.0)
    # fc3 (logits)
    out = jnp.dot(h2.astype(w3_ref.dtype), w3_ref[...],
                  preferred_element_type=jnp.float32)
    o_ref[...] = (out + b3_ref[...]).astype(o_ref.dtype)


def init_lenet_expert_params(key, feature_dim, num_classes):
    """PyTorch nn.Linear default init: U(-1/sqrt(fan_in), 1/sqrt(fan_in)).
    Weights stored as (in, out) so the kernel computes x @ W + b directly."""
    dims = [(feature_dim, 120), (120, 84), (84, num_classes)]
    params = []
    for (fan_in, fan_out) in dims:
        key, kw, kb = jax.random.split(key, 3)
        bound = 1.0 / jnp.sqrt(jnp.float32(fan_in))
        w = jax.random.uniform(kw, (fan_in, fan_out), jnp.float32,
                               minval=-bound, maxval=bound)
        b = jax.random.uniform(kb, (1, fan_out), jnp.float32,
                               minval=-bound, maxval=bound)
        params.extend([w, b])
    return tuple(params)


def pad_lenet_expert_params(params, compute_dtype=jnp.float32):
    """Zero-pad every lane dim to a multiple of 128, ONCE (not per forward).

    Weights are cast to `compute_dtype` (pass jnp.bfloat16 to halve the HBM
    streaming traffic; MXU accumulation stays f32). Biases stay f32 since they
    are added to the f32 accumulator.
    """
    w1, b1, w2, b2, w3, b3 = params
    F, H1 = w1.shape
    H2, C = w2.shape[1], w3.shape[1]
    Fp, H1p, H2p, Cp = (_round_up(d, 128) for d in (F, H1, H2, C))

    def pad_w(w, rows, cols):
        return jnp.pad(w, ((0, rows - w.shape[0]),
                           (0, cols - w.shape[1]))).astype(compute_dtype)

    def pad_b(b, cols):
        return jnp.pad(b, ((0, 0), (0, cols - b.shape[1]))).astype(jnp.float32)

    return (pad_w(w1, Fp, H1p), pad_b(b1, H1p),
            pad_w(w2, H1p, H2p), pad_b(b2, H2p),
            pad_w(w3, H2p, Cp), pad_b(b3, Cp))


def _choose_batch_tile(batch, batch_tile):
    br = _round_up(max(batch, 1), 8)              # sublane-aligned batch
    bt = _round_up(min(batch_tile, br), 8)
    # TC-aware split: for large batches make sure the "parallel" grid has at
    # least 2 steps so both v7x TensorCores (and DMA engines) get work.
    if br >= 1024 and pl.cdiv(br, bt) < 2:
        bt = _round_up(pl.cdiv(br, 2), 8)
    return bt


def lenet_expert_forward(x, padded_params, num_classes, *, batch_tile=1024):
    """Fused 3-layer MLP in one pallas_call, tiled over batch (ragged last tile).

    `padded_params` must come from `pad_lenet_expert_params` (lane dims padded
    to multiples of 128)."""
    w1p, b1p, w2p, b2p, w3p, b3p = padded_params
    B, F = x.shape
    Fp, H1p = w1p.shape
    H2p, Cp = w2p.shape[1], w3p.shape[1]

    # Pad the feature (lane) dim only if needed; NEVER pad/copy the batch dim.
    if F != Fp:
        x = jnp.pad(x, ((0, 0), (0, Fp - F)))
    if x.dtype != w1p.dtype:
        x = x.astype(w1p.dtype)                   # e.g. bf16 streaming path

    bt = _choose_batch_tile(B, batch_tile)
    grid = (pl.cdiv(B, bt),)                      # ragged last tile is fine

    itemsize = jnp.dtype(x.dtype).itemsize
    weight_bytes = sum(int(a.size) * jnp.dtype(a.dtype).itemsize
                       for a in padded_params)
    cost = pl.CostEstimate(
        flops=2 * B * (Fp * H1p + H1p * H2p + H2p * Cp),
        transcendentals=0,
        bytes_accessed=B * Fp * itemsize + B * Cp * 4 + weight_bytes,
    )

    out_padded = pl.pallas_call(
        lenet_expert_kernel,
        out_shape=jax.ShapeDtypeStruct((B, Cp), jnp.float32),
        grid_spec=pltpu.PrefetchScalarGridSpec(
            num_scalar_prefetch=0,
            grid=grid,
            in_specs=[
                pl.BlockSpec((bt, Fp), lambda i: (i, 0)),    # x tile (streamed)
                pl.BlockSpec((Fp, H1p), lambda i: (0, 0)),   # w1 (resident)
                pl.BlockSpec((1, H1p), lambda i: (0, 0)),    # b1
                pl.BlockSpec((H1p, H2p), lambda i: (0, 0)),  # w2 (resident)
                pl.BlockSpec((1, H2p), lambda i: (0, 0)),    # b2
                pl.BlockSpec((H2p, Cp), lambda i: (0, 0)),   # w3 (resident)
                pl.BlockSpec((1, Cp), lambda i: (0, 0)),     # b3
            ],
            out_specs=pl.BlockSpec((bt, Cp), lambda i: (i, 0)),
        ),
        compiler_params=pltpu.CompilerParams(
            dimension_semantics=("parallel",),
            # Footprint is < ~8 MiB even at bt=2048; 32 MiB leaves headroom on
            # v7x (64 MiB physical) and is irrelevant on v5e/v6e (128 MiB).
            vmem_limit_bytes=32 << 20,
        ),
        cost_estimate=cost,
    )(x, w1p, b1p, w2p, b2p, w3p, b3p)

    # Slice off class-lane padding only (batch was never padded).
    return out_padded[:, :num_classes]


if __name__ == "__main__":
    FEATURE_DIM = 256
    NUM_CLASSES = 10
    BATCH = 32     # small test batch; large batches use 1024-wide tiles

    key = jax.random.PRNGKey(0)
    key, kx = jax.random.split(key)
    x = jax.random.normal(kx, (BATCH, FEATURE_DIM), jnp.float32)
    params = init_lenet_expert_params(key, FEATURE_DIM, NUM_CLASSES)

    # Pad weights once outside the forward path (set compute_dtype=jnp.bfloat16
    # here to halve HBM traffic if reduced input precision is acceptable).
    padded_params = pad_lenet_expert_params(params, compute_dtype=jnp.float32)

    out = lenet_expert_forward(x, padded_params, NUM_CLASSES)
    out = jax.block_until_ready(out)

    # Pure-JAX reference (eval-mode dropout = identity).
    w1, b1, w2, b2, w3, b3 = params
    ref = jnp.maximum(x @ w1 + b1, 0.0)
    ref = jnp.maximum(ref @ w2 + b2, 0.0)
    ref = ref @ w3 + b3

    assert out.shape == (BATCH, NUM_CLASSES)
    # Tolerance covers possible MXU pass-precision differences between the
    # XLA default-precision f32 reference matmuls and the Pallas MXU dots;
    # structural bugs (missing bias/ReLU, wrong weights) are orders larger.
    assert jnp.allclose(out, ref, atol=2e-2, rtol=2e-2), (
        float(jnp.max(jnp.abs(out - ref))))

    print("KERNEL_OK")
</pallas_src>

<mosaic_0001>
module attributes {stable_mosaic.version = 11 : i64} {
  func.func @lenet_expert_kernel(%arg0: i32, %arg1: memref<32x256xf32, #tpu.memory_space<vmem>>, %arg2: memref<256x128xf32, #tpu.memory_space<vmem>>, %arg3: memref<1x128xf32, #tpu.memory_space<vmem>>, %arg4: memref<128x128xf32, #tpu.memory_space<vmem>>, %arg5: memref<1x128xf32, #tpu.memory_space<vmem>>, %arg6: memref<128x128xf32, #tpu.memory_space<vmem>>, %arg7: memref<1x128xf32, #tpu.memory_space<vmem>>, %arg8: memref<32x128xf32, #tpu.memory_space<vmem>>) attributes {dimension_semantics = [#tpu.dimension_semantics<parallel>], iteration_bounds = array<i64: 1>, scalar_prefetch = 0 : i64, scratch_operands = 0 : i64, tpu.core_type = #tpu.core_type<tc>, window_params = [{transform_indices = @transform_0, window_bounds = array<i64: 32, 256>}, {pipeline_mode = #tpu.pipeline_mode<synchronous>, transform_indices = @transform_1, window_bounds = array<i64: 256, 128>}, {pipeline_mode = #tpu.pipeline_mode<synchronous>, transform_indices = @transform_2, window_bounds = array<i64: 1, 128>}, {pipeline_mode = #tpu.pipeline_mode<synchronous>, transform_indices = @transform_3, window_bounds = array<i64: 128, 128>}, {pipeline_mode = #tpu.pipeline_mode<synchronous>, transform_indices = @transform_4, window_bounds = array<i64: 1, 128>}, {pipeline_mode = #tpu.pipeline_mode<synchronous>, transform_indices = @transform_5, window_bounds = array<i64: 128, 128>}, {pipeline_mode = #tpu.pipeline_mode<synchronous>, transform_indices = @transform_6, window_bounds = array<i64: 1, 128>}, {transform_indices = @transform_7, window_bounds = array<i64: 32, 128>}]} {
    %c0 = arith.constant 0 : index
    %c0_0 = arith.constant 0 : index
    %0 = vector.load %arg1[%c0, %c0_0] : memref<32x256xf32, #tpu.memory_space<vmem>>, vector<32x256xf32>
    %c0_1 = arith.constant 0 : index
    %c0_2 = arith.constant 0 : index
    %1 = vector.load %arg2[%c0_1, %c0_2] : memref<256x128xf32, #tpu.memory_space<vmem>>, vector<256x128xf32>
    %cst = arith.constant dense<0.000000e+00> : vector<32x128xf32>
    %2 = tpu.matmul %0, %1, %cst {dimension_numbers = #tpu.dot_dimension_numbers<[1], [0], [0], [1], [0, 0, 1, 1], [], []>} : vector<32x256xf32>, vector<256x128xf32>, vector<32x128xf32> -> vector<32x128xf32>
    %c0_3 = arith.constant 0 : index
    %c0_4 = arith.constant 0 : index
    %3 = vector.load %arg3[%c0_3, %c0_4] : memref<1x128xf32, #tpu.memory_space<vmem>>, vector<1x128xf32>
    %4 = vector.broadcast %3 : vector<1x128xf32> to vector<32x128xf32>
    %5 = arith.addf %2, %4 : vector<32x128xf32>
    %cst_5 = arith.constant 0.000000e+00 : f32
    %6 = vector.broadcast %cst_5 : f32 to vector<32x128xf32>
    %7 = arith.maximumf %5, %6 : vector<32x128xf32>
    %c0_6 = arith.constant 0 : index
    %c0_7 = arith.constant 0 : index
    %8 = vector.load %arg4[%c0_6, %c0_7] : memref<128x128xf32, #tpu.memory_space<vmem>>, vector<128x128xf32>
    %cst_8 = arith.constant dense<0.000000e+00> : vector<32x128xf32>
    %9 = tpu.matmul %7, %8, %cst_8 {dimension_numbers = #tpu.dot_dimension_numbers<[1], [0], [0], [1], [0, 0, 1, 1], [], []>} : vector<32x128xf32>, vector<128x128xf32>, vector<32x128xf32> -> vector<32x128xf32>
    %c0_9 = arith.constant 0 : index
    %c0_10 = arith.constant 0 : index
    %10 = vector.load %arg5[%c0_9, %c0_10] : memref<1x128xf32, #tpu.memory_space<vmem>>, vector<1x128xf32>
    %11 = vector.broadcast %10 : vector<1x128xf32> to vector<32x128xf32>
    %12 = arith.addf %9, %11 : vector<32x128xf32>
    %cst_11 = arith.constant 0.000000e+00 : f32
    %13 = vector.broadcast %cst_11 : f32 to vector<32x128xf32>
    %14 = arith.maximumf %12, %13 : vector<32x128xf32>
    %c0_12 = arith.constant 0 : index
    %c0_13 = arith.constant 0 : index
    %15 = vector.load %arg6[%c0_12, %c0_13] : memref<128x128xf32, #tpu.memory_space<vmem>>, vector<128x128xf32>
    %cst_14 = arith.constant dense<0.000000e+00> : vector<32x128xf32>
    %16 = tpu.matmul %14, %15, %cst_14 {dimension_numbers = #tpu.dot_dimension_numbers<[1], [0], [0], [1], [0, 0, 1, 1], [], []>} : vector<32x128xf32>, vector<128x128xf32>, vector<32x128xf32> -> vector<32x128xf32>
    %c0_15 = arith.constant 0 : index
    %c0_16 = arith.constant 0 : index
    %17 = vector.load %arg7[%c0_15, %c0_16] : memref<1x128xf32, #tpu.memory_space<vmem>>, vector<1x128xf32>
    %18 = vector.broadcast %17 : vector<1x128xf32> to vector<32x128xf32>
    %19 = arith.addf %16, %18 : vector<32x128xf32>
    %c0_17 = arith.constant 0 : index
    %c0_18 = arith.constant 0 : index
    %20 = vector.load %arg8[%c0_17, %c0_18] : memref<32x128xf32, #tpu.memory_space<vmem>>, vector<32x128xf32>
    tpu.vector_store %arg8[%c0_17, %c0_18], %19 {strides = array<i32>} : memref<32x128xf32, #tpu.memory_space<vmem>>, vector<32x128xf32>,
    return
  }
  func.func @transform_0(%arg0: i32) -> (i32, i32) {
    %c0_i32 = arith.constant 0 : i32
    %c0_i32_0 = arith.constant 0 : i32
    return %arg0, %c0_i32 : i32, i32
  }
  func.func @transform_1(%arg0: i32) -> (i32, i32) {
    %c0_i32 = arith.constant 0 : i32
    %c0_i32_0 = arith.constant 0 : i32
    %c0_i32_1 = arith.constant 0 : i32
    return %c0_i32, %c0_i32_0 : i32, i32
  }
  func.func @transform_2(%arg0: i32) -> (i32, i32) {
    %c0_i32 = arith.constant 0 : i32
    %c0_i32_0 = arith.constant 0 : i32
    %c0_i32_1 = arith.constant 0 : i32
    return %c0_i32, %c0_i32_0 : i32, i32
  }
  func.func @transform_3(%arg0: i32) -> (i32, i32) {
    %c0_i32 = arith.constant 0 : i32
    %c0_i32_0 = arith.constant 0 : i32
    %c0_i32_1 = arith.constant 0 : i32
    return %c0_i32, %c0_i32_0 : i32, i32
  }
  func.func @transform_4(%arg0: i32) -> (i32, i32) {
    %c0_i32 = arith.constant 0 : i32
    %c0_i32_0 = arith.constant 0 : i32
    %c0_i32_1 = arith.constant 0 : i32
    return %c0_i32, %c0_i32_0 : i32, i32
  }
  func.func @transform_5(%arg0: i32) -> (i32, i32) {
    %c0_i32 = arith.constant 0 : i32
    %c0_i32_0 = arith.constant 0 : i32
    %c0_i32_1 = arith.constant 0 : i32
    return %c0_i32, %c0_i32_0 : i32, i32
  }
  func.func @transform_6(%arg0: i32) -> (i32, i32) {
    %c0_i32 = arith.constant 0 : i32
    %c0_i32_0 = arith.constant 0 : i32
    %c0_i32_1 = arith.constant 0 : i32
    return %c0_i32, %c0_i32_0 : i32, i32
  }
  func.func @transform_7(%arg0: i32) -> (i32, i32) {
    %c0_i32 = arith.constant 0 : i32
    %c0_i32_0 = arith.constant 0 : i32
    return %arg0, %c0_i32 : i32, i32
  }
}

</mosaic_0001>

<bundles_post_ra>
// kernel: tpu_custom_call.1
= control target key start
LH: loop header
LB: loop body
LE: loop exit
PB: predicated region body
PF: predicated region fallthrough
CT: control target
= control target key end

     0   :  { %12 = vsyncpa [#allocation3], 0  ;;  %s858_s0 = inlined_call_operand.hbm [shape: f32[32,256], index: 0, kind: input, shape index: {}]   ;;  %s859_s1 = inlined_call_operand.hbm [shape: f32[256,128], index: 1, kind: input, shape index: {}]   ;;  %s860_s2 = inlined_call_operand.vmem [shape: f32[1,128], index: 2, kind: input, shape index: {}]   ;;  %s861_s3 = inlined_call_operand.hbm [shape: f32[128,128], index: 3, kind: input, shape index: {}]   ;;  %s862_s4 = inlined_call_operand.vmem [shape: f32[1,128], index: 4, kind: input, shape index: {}]   ;;  %s863_s5 = inlined_call_operand.hbm [shape: f32[128,128], index: 5, kind: input, shape index: {}]   ;;  %s864_s6 = inlined_call_operand.vmem [shape: f32[1,128], index: 6, kind: input, shape index: {}]   ;;  %s865_s7 = inlined_call_operand.hbm [shape: f32[32,128], index: 7, kind: output, shape index: {}]  }
   0x1   :  { %13 = vsyncpa [#allocation6], 0 }
   0x2   :  { %14 = vsyncpa [#allocation9], 0 }
   0x3   :  { %15 = vsyncpa [#allocation4], 0  ;;  %s773_s24 = smov [#allocation5]  }
   0x4   :  { %s33_s25 = sshll.u32 %s773_s24, 4  ;;  %s34_s25 = int_to_ptr.vmem [resolvable:$true] %s33_s25 }
   0x5   :  { %s673_s26 = scalar_lea.vmem %s34_s25, 4096  ;;  %p678_p1 = scmp.lt.s32.totalorder %s34_s25, %s34_s25 }
   0x6   :  { %p674_p0 = scmp.ne.s32.totalorder %s34_s25, %s673_s26  ;;  %p679_p2 = scmp.lt.s32.totalorder %s673_s26, %s673_s26 }
   0x8   :  { %p680_p3 = por %p679_p2, %p678_p1 }
   0xa   :  { %p681_p4 = pnand %p680_p3, %p674_p0 }
   0xc   :  { %684 = shalt.err (!%p681_p4)
}
   0xd   :  { %s774_s27 = smov 128   ;;  %s775_s28 = smov 8  }
   0xe   :  { %39 = dma.hbm_to_vmem [thread:$0]  %s859_s1, 4096, %s34_s25, [#allocation6], %s774_s27, %s774_s27, %s775_s28  }
   0xf   :  { %s776_s8 = smov [#allocation2]  }
  0x10   :  { %s21_s9 = sshll.u32 %s776_s8, 4  ;;  %s22_s9 = int_to_ptr.vmem [resolvable:$true] %s21_s9 }
  0x11   :  { %s693_s10 = scalar_lea.vmem %s22_s9, 1024  ;;  %p698_p6 = scmp.lt.s32.totalorder %s22_s9, %s22_s9 }
  0x12   :  { %p694_p5 = scmp.ne.s32.totalorder %s22_s9, %s693_s10  ;;  %p699_p7 = scmp.lt.s32.totalorder %s693_s10, %s693_s10 }
  0x14   :  { %p700_p8 = por %p699_p7, %p698_p6 }
  0x16   :  { %p701_p9 = pnand %p700_p8, %p694_p5 }
  0x18   :  { %704 = shalt.err (!%p701_p9)
}
  0x19   :  { %s777_s11 = smov 256   ;;  %s778_s12 = smov 16  }
  0x1a   :  { %27 = dma.hbm_to_vmem [thread:$0]  %s858_s0, 1024, %s22_s9, [#allocation3], %s777_s11, %s777_s11, %s778_s12  }
  0x1b   :  { %s779_s15 = smov [#allocation7]   ;;  %s780_s17 = smov [#allocation8]  }
  0x1c   :  { %s47_s16 = sshll.u32 %s779_s15, 4  ;;  %s61_s1 = sshll.u32 %s780_s17, 4  ;;  %s48_s16 = int_to_ptr.vmem [resolvable:$true] %s47_s16  ;;  %s62_s1 = int_to_ptr.vmem [resolvable:$true] %s61_s1 }
  0x1d   :  { %s713_s18 = scalar_lea.vmem %s48_s16, 2048  ;;  %p718_p11 = scmp.lt.s32.totalorder %s48_s16, %s48_s16 }
  0x1e   :  { %p714_p10 = scmp.ne.s32.totalorder %s48_s16, %s713_s18  ;;  %p719_p12 = scmp.lt.s32.totalorder %s713_s18, %s713_s18 }
  0x20   :  { %p720_p13 = por %p719_p12, %p718_p11 }
  0x22   :  { %p721_p0 = pnand %p720_p13, %p714_p10 }
  0x24   :  { %724 = shalt.err (!%p721_p0)
}
  0x25   :  { %53 = dma.hbm_to_vmem [thread:$0]  %s861_s3, 2048, %s48_s16, [#allocation6], %s774_s27, %s774_s27, %s775_s28  }
  0x26   :  { %s733_s0 = scalar_lea.vmem %s62_s1, 2048  ;;  %p738_p2 = scmp.lt.s32.totalorder %s62_s1, %s62_s1 }
  0x27   :  { %p734_p1 = scmp.ne.s32.totalorder %s62_s1, %s733_s0  ;;  %p739_p3 = scmp.lt.s32.totalorder %s733_s0, %s733_s0 }
  0x29   :  { %p740_p4 = por %p739_p3, %p738_p2 }
  0x2b   :  { %p741_p5 = pnand %p740_p4, %p734_p1 }
  0x2d   :  { %744 = shalt.err (!%p741_p5)
}
  0x2e   :  { %67 = dma.hbm_to_vmem [thread:$0]  %s863_s5, 2048, %s62_s1, [#allocation9], %s774_s27, %s774_s27, %s775_s28  }
  0x2f   :  { %765 = dma.done.wait [#allocation3], 1024  }
  0x30   :  { %766 = vsyncadd [#allocation3], 4294966272 }
  0x31   :  { %767 = dma.done.wait [#allocation6], 6144  }
  0x32   :  { %768 = vsyncadd [#allocation6], 4294961152 }
  0x33   :  { %769 = dma.done.wait [#allocation9], 2048  }
  0x34   :  { %770 = vsyncadd [#allocation9], 4294965248  ;;  %v121_v0 = vld [vmem:[#allocation5 + $0xf8] sm:$0xff]  ;;  %v120_v2 = vld [vmem:[#allocation5 + $0xf0] sm:$0xff] }
  0x35   :  { %v105_v1 = vld [vmem:[#allocation5 + $0x78] sm:$0xff]  ;;  %464 = vmatprep.subr.mxu0 %v121_v0  ;;  %v104_v3 = vld [vmem:[#allocation5 + $0x70] sm:$0xff]  ;;  %v119_v4 = vld [vmem:[#allocation5 + $0xe8] sm:$0xff] }
  0x36   :  { %465 = vmatpush3.msra.mxu0 %v105_v1  ;;  %v103_v5 = vld [vmem:[#allocation5 + $0x68] sm:$0xff]  ;;  %v118_v6 = vld [vmem:[#allocation5 + $0xe0] sm:$0xff]  ;;  %v117_v8 = vld [vmem:[#allocation5 + $0xd8] sm:$0xff] }
  0x37   :  { %466 = vmatprep.subr.mxu0 %v120_v2  ;;  %v102_v7 = vld [vmem:[#allocation5 + $0x60] sm:$0xff]  ;;  %v101_v9 = vld [vmem:[#allocation5 + $0x58] sm:$0xff]  ;;  %v116_v10 = vld [vmem:[#allocation5 + $0xd0] sm:$0xff] }
  0x38   :  { %467 = vmatpush3.msra.mxu0 %v104_v3  ;;  %v100_v11 = vld [vmem:[#allocation5 + $0x50] sm:$0xff]  ;;  %v115_v12 = vld [vmem:[#allocation5 + $0xc8] sm:$0xff]  ;;  %v114_v15 = vld [vmem:[#allocation5 + $0xc0] sm:$0xff] }
  0x39   :  { %468 = vmatprep.subr.mxu0 %v119_v4  ;;  %v83_v13 = vld [vmem:[#allocation2 + $0x8] sm:$0xff]  ;;  %v98_v16 = vld [vmem:[#allocation5 + $0x40] sm:$0xff]  ;;  %v233_v17 = vld [vmem:[#allocation7 + $0x78] sm:$0xff] }
  0x3a   :  { %469 = vmatpush3.msra.mxu0 %v103_v5  ;;  %v99_v14 = vld [vmem:[#allocation5 + $0x48] sm:$0xff]  ;;  %193 = vmatprep.mubr.f32.mxu0 %v83_v13  ;;  %v232_v18 = vld [vmem:[#allocation7 + $0x70] sm:$0xff]  ;;  %v113_v19 = vld [vmem:[#allocation5 + $0xb8] sm:$0xff] }
  0x3b   :  { %470 = vmatprep.subr.mxu0 %v118_v6  ;;  %548 = vmatprep.subr.mxu1 %v233_v17  ;;  %v97_v20 = vld [vmem:[#allocation5 + $0x38] sm:$0xff]  ;;  %v231_v21 = vld [vmem:[#allocation7 + $0x68] sm:$0xff]  ;;  %v112_v22 = vld [vmem:[#allocation5 + $0xb0] sm:$0xff] }
  0x3c   :  { %471 = vmatpush3.msra.mxu0 %v102_v7  ;;  %549 = vmatpush3.msra.mxu1 %v233_v17  ;;  %v96_v23 = vld [vmem:[#allocation5 + $0x30] sm:$0xff]  ;;  %v230_v24 = vld [vmem:[#allocation7 + $0x60] sm:$0xff]  ;;  %v111_v25 = vld [vmem:[#allocation5 + $0xa8] sm:$0xff] }
  0x3d   :  { %472 = vmatprep.subr.mxu0 %v117_v8  ;;  %550 = vmatprep.subr.mxu1 %v232_v18  ;;  %v95_v26 = vld [vmem:[#allocation5 + $0x28] sm:$0xff]  ;;  %v229_v27 = vld [vmem:[#allocation7 + $0x58] sm:$0xff]  ;;  %v110_v28 = vld [vmem:[#allocation5 + $0xa0] sm:$0xff] }
  0x3e   :  { %473 = vmatpush3.msra.mxu0 %v101_v9  ;;  %551 = vmatpush3.msra.mxu1 %v232_v18  ;;  %v94_v29 = vld [vmem:[#allocation5 + $0x20] sm:$0xff]  ;;  %v228_v30 = vld [vmem:[#allocation7 + $0x50] sm:$0xff]  ;;  %v109_v31 = vld [vmem:[#allocation5 + $0x98] sm:$0xff] }
  0x3f   :  { %474 = vmatprep.subr.mxu0 %v116_v10  ;;  %552 = vmatprep.subr.mxu1 %v231_v21  ;;  %v93_v32 = vld [vmem:[#allocation5 + $0x18] sm:$0xff]  ;;  %v227_v33 = vld [vmem:[#allocation7 + $0x48] sm:$0xff]  ;;  %v108_v34 = vld [vmem:[#allocation5 + $0x90] sm:$0xff] }
  0x40   :  { %475 = vmatpush3.msra.mxu0 %v100_v11  ;;  %553 = vmatpush3.msra.mxu1 %v231_v21  ;;  %v92_v35 = vld [vmem:[#allocation5 + $0x10] sm:$0xff]  ;;  %v226_v36 = vld [vmem:[#allocation7 + $0x40] sm:$0xff]  ;;  %v107_v37 = vld [vmem:[#allocation5 + $0x88] sm:$0xff] }
  0x41   :  { %476 = vmatprep.subr.mxu0 %v115_v12  ;;  %554 = vmatprep.subr.mxu1 %v230_v24  ;;  %v91_v38 = vld [vmem:[#allocation5 + $0x8] sm:$0xff]  ;;  %v225_v39 = vld [vmem:[#allocation7 + $0x38] sm:$0xff]  ;;  %v106_v40 = vld [vmem:[#allocation5 + $0x80] sm:$0xff] }
  0x42   :  { %477 = vmatpush3.msra.mxu0 %v99_v14  ;;  %555 = vmatpush3.msra.mxu1 %v230_v24  ;;  %v90_v41 = vld [vmem:[#allocation5] sm:$0xff]  ;;  %v224_v42 = vld [vmem:[#allocation7 + $0x30] sm:$0xff]  ;;  %v85_v44 = vld [vmem:[#allocation2 + $0x18] sm:$0xff] }
  0x43   :  { %478 = vmatprep.subr.mxu0 %v114_v15  ;;  %556 = vmatprep.subr.mxu1 %v229_v27  ;;  %v82_v43 = vld [vmem:[#allocation2] sm:$0xff]  ;;  %v84_v45 = vld [vmem:[#allocation2 + $0x10] sm:$0xff]  ;;  %v87_v46 = vld [vmem:[#allocation2 + $0x28] sm:$0xff] }
  0x44   :  { %479 = vmatpush3.msra.mxu0 %v98_v16  ;;  %557 = vmatpush3.msra.mxu1 %v229_v27  ;;  %v86_v47 = vld [vmem:[#allocation2 + $0x20] sm:$0xff]  ;;  %v89_v48 = vld [vmem:[#allocation2 + $0x38] sm:$0xff]  ;;  %v88_v49 = vld [vmem:[#allocation2 + $0x30] sm:$0xff] }
  0x45   :  { %480 = vmatprep.subr.mxu0 %v113_v19  ;;  %558 = vmatprep.subr.mxu1 %v228_v30  ;;  %v223_v50 = vld [vmem:[#allocation7 + $0x28] sm:$0xff]  ;;  %v222_v51 = vld [vmem:[#allocation7 + $0x20] sm:$0xff]  ;;  %v221_v52 = vld [vmem:[#allocation7 + $0x18] sm:$0xff] }
  0x46   :  { %481 = vmatpush3.msra.mxu0 %v97_v20  ;;  %559 = vmatpush3.msra.mxu1 %v228_v30  ;;  %v220_v53 = vld [vmem:[#allocation7 + $0x10] sm:$0xff]  ;;  %v219_v54 = vld [vmem:[#allocation7 + $0x8] sm:$0xff]  ;;  %v218_v55 = vld [vmem:[#allocation7] sm:$0xff] }
  0x47   :  { %482 = vmatprep.subr.mxu0 %v112_v22  ;;  %560 = vmatprep.subr.mxu1 %v227_v33  ;;  %v345_v56 = vld [vmem:[#allocation8 + $0x78] sm:$0xff]  ;;  %v344_v57 = vld [vmem:[#allocation8 + $0x70] sm:$0xff]  ;;  %v343_v58 = vld [vmem:[#allocation8 + $0x68] sm:$0xff] }
  0x48   :  { %483 = vmatpush3.msra.mxu0 %v96_v23  ;;  %561 = vmatpush3.msra.mxu1 %v227_v33  ;;  %v342_v59 = vld [vmem:[#allocation8 + $0x60] sm:$0xff]  ;;  %v341_v60 = vld [vmem:[#allocation8 + $0x58] sm:$0xff]  ;;  %v340_v61 = vld [vmem:[#allocation8 + $0x50] sm:$0xff] }
  0x49   :  { %484 = vmatprep.subr.mxu0 %v111_v25  ;;  %562 = vmatprep.subr.mxu1 %v226_v36  ;;  %v339_v62 = vld [vmem:[#allocation8 + $0x48] sm:$0xff]  ;;  %v338_v63 = vld [vmem:[#allocation8 + $0x40] sm:$0xff]  ;;  %v337_v0 = vld [vmem:[#allocation8 + $0x38] sm:$0xff] }
  0x4a   :  { %485 = vmatpush3.msra.mxu0 %v95_v26  ;;  %563 = vmatpush3.msra.mxu1 %v226_v36  ;;  %v336_v1 = vld [vmem:[#allocation8 + $0x30] sm:$0xff]  ;;  %v335_v2 = vld [vmem:[#allocation8 + $0x28] sm:$0xff]  ;;  %v334_v3 = vld [vmem:[#allocation8 + $0x20] sm:$0xff] }
  0x4b   :  { %486 = vmatprep.subr.mxu0 %v110_v28  ;;  %564 = vmatprep.subr.mxu1 %v225_v39  ;;  %v461_v6 = vld [vmem:[%s860_s2] ss:$0 sm:$0xff]  ;;  %v333_v25 = vld [vmem:[#allocation8 + $0x18] sm:$0xff]  ;;  %v332_v26 = vld [vmem:[#allocation8 + $0x10] sm:$0xff] }
  0x4c   :  { %487 = vmatpush3.msra.mxu0 %v94_v29  ;;  %565 = vmatpush3.msra.mxu1 %v225_v39  ;;  %v331_v27 = vld [vmem:[#allocation8 + $0x8] sm:$0xff]  ;;  %v330_v28 = vld [vmem:[#allocation8] sm:$0xff] }
  0x4d   :  { %488 = vmatprep.subr.mxu0 %v109_v31  ;;  %566 = vmatprep.subr.mxu1 %v224_v42  ;;  %v462_v29 = vld [vmem:[%s862_s4] ss:$0 sm:$0xff]  ;;  %s781_s4 = smov [#allocation10]  }
  0x4e   :  { %489 = vmatpush3.msra.mxu0 %v93_v32  ;;  %567 = vmatpush3.msra.mxu1 %v224_v42  ;;  %v463_v42 = vld [vmem:[%s864_s6] ss:$0 sm:$0xff]  ;;  %s447_s26 = sshll.u32 %s781_s4, 4  ;;  %s448_s26 = int_to_ptr.vmem [resolvable:$true] %s447_s26 }
  0x4f   :  { %490 = vmatprep.subr.mxu0 %v108_v34  ;;  %568 = vmatprep.subr.mxu1 %v223_v50  ;;  %s745_s29 = scalar_lea.vmem %s448_s26, 512  ;;  %p750_p7 = scmp.lt.s32.totalorder %s448_s26, %s448_s26 }
  0x50   :  { %491 = vmatpush3.msra.mxu0 %v92_v35  ;;  %569 = vmatpush3.msra.mxu1 %v223_v50  ;;  %p746_p6 = scmp.ne.s32.totalorder %s448_s26, %s745_s29  ;;  %p751_p8 = scmp.lt.s32.totalorder %s745_s29, %s745_s29 }
  0x51   :  { %492 = vmatprep.subr.mxu0 %v107_v37  ;;  %570 = vmatprep.subr.mxu1 %v222_v51 }
  0x52   :  { %493 = vmatpush3.msra.mxu0 %v91_v38  ;;  %571 = vmatpush3.msra.mxu1 %v222_v51  ;;  %p752_p9 = por %p751_p8, %p750_p7 }
  0x53   :  { %494 = vmatprep.subr.mxu0 %v106_v40  ;;  %572 = vmatprep.subr.mxu1 %v221_v52 }
  0x54   :  { %495 = vmatpush3.msra.mxu0 %v90_v41  ;;  %573 = vmatpush3.msra.mxu1 %v221_v52  ;;  %p753_p10 = pnand %p752_p9, %p746_p6 }
  0x55   :  { %194 = vmatmul.mubr.f32.vlgmr.msra.gmra.mxu0 %v82_v43  ;;  %574 = vmatprep.subr.mxu1 %v220_v53 }
  0x56   :  { %198 = vmatprep.mubr.f32.mxu0 %v85_v44  ;;  %575 = vmatpush3.msra.mxu1 %v220_v53 }
  0x57   :  { %576 = vmatprep.subr.mxu1 %v219_v54  ;;  %586 = vmatprep.subr.mxu0 %v345_v56 }
  0x58   :  { %577 = vmatpush3.msra.mxu1 %v219_v54  ;;  %587 = vmatpush3.msra.mxu0 %v345_v56 }
  0x59   :  { %199 = vmatmul.mubr.f32.gmra.mxu0 %v84_v45  ;;  %578 = vmatprep.subr.mxu1 %v218_v55 }
  0x5a   :  { %203 = vmatprep.mubr.f32.mxu0 %v87_v46  ;;  %579 = vmatpush3.msra.mxu1 %v218_v55 }
  0x5b   :  { %624 = vmatprep.subr.mxu1 %v345_v56  ;;  %588 = vmatprep.subr.mxu0 %v344_v57 }
  0x5c   :  { %589 = vmatpush3.msra.mxu0 %v344_v57 }
  0x5d   :  { %204 = vmatmul.mubr.f32.gmra.mxu0 %v86_v47  ;;  %590 = vmatprep.subr.mxu0 %v343_v58 }
  0x5e   :  { %208 = vmatprep.mubr.f32.mxu0 %v89_v48  ;;  %591 = vmatpush3.msra.mxu0 %v343_v58 }
  0x5f   :  { %592 = vmatprep.subr.mxu0 %v342_v59 }
  0x60   :  { %593 = vmatpush3.msra.mxu0 %v342_v59 }
  0x61   :  { %209 = vmatmul.mubr.f32.gmra.mxu0 %v88_v49  ;;  %594 = vmatprep.subr.mxu0 %v341_v60 }
  0x62   :  { %595 = vmatpush3.msra.mxu0 %v341_v60 }
  0x63   :  { %596 = vmatprep.subr.mxu0 %v340_v61 }
  0x64   :  { %597 = vmatpush3.msra.mxu0 %v340_v61 }
  0x65   :  { %598 = vmatprep.subr.mxu0 %v339_v62 }
  0x66   :  { %599 = vmatpush3.msra.mxu0 %v339_v62 }
  0x67   :  { %600 = vmatprep.subr.mxu0 %v338_v63 }
  0x68   :  { %601 = vmatpush3.msra.mxu0 %v338_v63 }
  0x69   :  { %602 = vmatprep.subr.mxu0 %v337_v0 }
  0x6a   :  { %603 = vmatpush3.msra.mxu0 %v337_v0 }
  0x6b   :  { %604 = vmatprep.subr.mxu0 %v336_v1 }
  0x6c   :  { %605 = vmatpush3.msra.mxu0 %v336_v1 }
  0x6d   :  { %606 = vmatprep.subr.mxu0 %v335_v2 }
  0x6e   :  { %607 = vmatpush3.msra.mxu0 %v335_v2 }
  0x6f   :  { %608 = vmatprep.subr.mxu0 %v334_v3 }
  0x70   :  { %609 = vmatpush3.msra.mxu0 %v334_v3 }
  0x71   :  { %610 = vmatprep.subr.mxu0 %v333_v25 }
  0x72   :  { %611 = vmatpush3.msra.mxu0 %v333_v25 }
  0x73   :  { %612 = vmatprep.subr.mxu0 %v332_v26 }
  0x74   :  { %613 = vmatpush3.msra.mxu0 %v332_v26 }
  0x75   :  { %614 = vmatprep.subr.mxu0 %v331_v27 }
  0x76   :  { %615 = vmatpush3.msra.mxu0 %v331_v27 }
  0x77   :  { %616 = vmatprep.subr.mxu0 %v330_v28 }
  0x78   :  { %617 = vmatpush3.msra.mxu0 %v330_v28 }
 0x115   :  { %v496_v4 = vpop.f32.mrf.mxu0 }
 0x117   :  { %v497_v5 = vpop.f32.mrf.mxu0 }
 0x118   :  { %v498_v7 = vadd.f32 %v497_v5, %v496_v4 }
 0x119   :  { %v499_v8 = vpop.f32.mrf.mxu0 }
 0x11a   :  { %v196_v9 = vadd.f32 %v498_v7, %v461_v6 }
 0x11b   :  { %v500_v10 = vpop.f32.mrf.mxu0 }
 0x11c   :  { %v501_v11 = vadd.f32 %v500_v10, %v499_v8  ;;  %v214_v12 = vmax.f32 %v196_v9, 0.0 }
 0x11d   :  { %v502_v13 = vpop.f32.mrf.mxu0 }
 0x11e   :  { %v201_v14 = vadd.f32 %v501_v11, %v461_v6  ;;  %580 = vmatprep.mubr.f32.mxu1 %v214_v12 }
 0x11f   :  { %v503_v15 = vpop.f32.mrf.mxu0 }
 0x120   :  { %v215_v16 = vmax.f32 %v201_v14, 0.0  ;;  %v504_v17 = vadd.f32 %v503_v15, %v502_v13 }
 0x121   :  { %v505_v18 = vpop.f32.mrf.mxu0 }
 0x122   :  { %v206_v19 = vadd.f32 %v504_v17, %v461_v6  ;;  %581 = vmatmul.mubr.f32.vlgmr.msra.gmra.mxu1 %v215_v16 }
 0x123   :  { %v506_v20 = vpop.f32.mrf.mxu0  ;;  %640 = vmatpush3.msra.mxu1 %v345_v56 }
 0x124   :  { %v216_v21 = vmax.f32 %v206_v19, 0.0  ;;  %v507_v22 = vadd.f32 %v506_v20, %v505_v18  ;;  %625 = vmatprep.subr.mxu1 %v344_v57 }
 0x125   :  { %641 = vmatpush3.msra.mxu1 %v344_v57 }
 0x126   :  { %v211_v23 = vadd.f32 %v507_v22, %v461_v6  ;;  %583 = vmatprep.mubr.f32.mxu1 %v216_v21  ;;  %626 = vmatprep.subr.mxu1 %v343_v58 }
 0x127   :  { %642 = vmatpush3.msra.mxu1 %v343_v58 }
 0x128   :  { %v217_v24 = vmax.f32 %v211_v23, 0.0  ;;  %627 = vmatprep.subr.mxu1 %v342_v59 }
 0x129   :  { %643 = vmatpush3.msra.mxu1 %v342_v59 }
 0x12a   :  { %584 = vmatmul.mubr.f32.gmra.mxu1 %v217_v24  ;;  %628 = vmatprep.subr.mxu1 %v341_v60 }
 0x12b   :  { %644 = vmatpush3.msra.mxu1 %v341_v60 }
 0x12c   :  { %629 = vmatprep.subr.mxu1 %v340_v61 }
 0x12d   :  { %645 = vmatpush3.msra.mxu1 %v340_v61 }
 0x12e   :  { %630 = vmatprep.subr.mxu1 %v339_v62 }
 0x12f   :  { %646 = vmatpush3.msra.mxu1 %v339_v62 }
 0x130   :  { %631 = vmatprep.subr.mxu1 %v338_v63 }
 0x131   :  { %647 = vmatpush3.msra.mxu1 %v338_v63 }
 0x132   :  { %632 = vmatprep.subr.mxu1 %v337_v0 }
 0x133   :  { %648 = vmatpush3.msra.mxu1 %v337_v0 }
 0x134   :  { %633 = vmatprep.subr.mxu1 %v336_v1 }
 0x135   :  { %649 = vmatpush3.msra.mxu1 %v336_v1 }
 0x136   :  { %634 = vmatprep.subr.mxu1 %v335_v2 }
 0x137   :  { %650 = vmatpush3.msra.mxu1 %v335_v2 }
 0x138   :  { %635 = vmatprep.subr.mxu1 %v334_v3 }
 0x139   :  { %651 = vmatpush3.msra.mxu1 %v334_v3 }
 0x13a   :  { %636 = vmatprep.subr.mxu1 %v333_v25 }
 0x13b   :  { %652 = vmatpush3.msra.mxu1 %v333_v25 }
 0x13c   :  { %637 = vmatprep.subr.mxu1 %v332_v26 }
 0x13d   :  { %653 = vmatpush3.msra.mxu1 %v332_v26 }
 0x13e   :  { %638 = vmatprep.subr.mxu1 %v331_v27 }
 0x13f   :  { %654 = vmatpush3.msra.mxu1 %v331_v27 }
 0x140   :  { %639 = vmatprep.subr.mxu1 %v330_v28 }
 0x141   :  { %655 = vmatpush3.msra.mxu1 %v330_v28 }
 0x1e2   :  { %v582_v30 = vpop.f32.mrf.mxu1 }
 0x1e3   :  { %v313_v31 = vadd.f32 %v582_v30, %v462_v29 }
 0x1e4   :  { %v307_v32 = vpop.f32.mrf.mxu1 }
 0x1e5   :  { %v308_v33 = vadd.f32 %v462_v29, %v307_v32  ;;  %v327_v35 = vmax.f32 %v313_v31, 0.0 }
 0x1e7   :  { %v326_v34 = vmax.f32 %v308_v33, 0.0 }
 0x1e9   :  { %618 = vmatprep.mubr.f32.mxu0 %v326_v34 }
 0x1ea   :  { %v585_v36 = vpop.f32.mrf.mxu1  ;;  %619 = vmatmul.mubr.f32.vlgmr.msra.gmra.mxu0 %v327_v35 }
 0x1eb   :  { %v323_v37 = vadd.f32 %v585_v36, %v462_v29 }
 0x1ec   :  { %v317_v38 = vpop.f32.mrf.mxu1 }
 0x1ed   :  { %v318_v39 = vadd.f32 %v462_v29, %v317_v38  ;;  %v329_v41 = vmax.f32 %v323_v37, 0.0 }
 0x1ef   :  { %v328_v40 = vmax.f32 %v318_v39, 0.0 }
 0x1f1   :  { %621 = vmatprep.mubr.f32.mxu1 %v328_v40 }
 0x1f2   :  { %622 = vmatmul.mubr.f32.vlgmr.msra.gmra.mxu1 %v329_v41 }
 0x2aa   :  { %v620_v43 = vpop.f32.mrf.mxu0 }
 0x2ab   :  { %v425_v44 = vadd.f32 %v620_v43, %v463_v42 }
 0x2ac   :  { %v419_v45 = vpop.f32.mrf.mxu0 }
 0x2ad   :  { %439 = vst [vmem:[#allocation10 + $0x8] sm:$0xff] %v425_v44  ;;  %v420_v46 = vadd.f32 %v463_v42, %v419_v45 }
 0x2af   :  { %438 = vst [vmem:[#allocation10] sm:$0xff] %v420_v46 }
 0x2b2   :  { %v623_v47 = vpop.f32.mrf.mxu1 }
 0x2b3   :  { %v435_v48 = vadd.f32 %v623_v47, %v463_v42 }
 0x2b4   :  { %v429_v49 = vpop.f32.mrf.mxu1 }
 0x2b5   :  { %441 = vst [vmem:[#allocation10 + $0x18] sm:$0xff] %v435_v48  ;;  %v430_v50 = vadd.f32 %v463_v42, %v429_v49 }
 0x2b7   :  { %440 = vst [vmem:[#allocation10 + $0x10] sm:$0xff] %v430_v50 }
 0x2b8   :  { %756 = shalt.err (!%p753_p10)
}
 0x2b9   :  { %453 = dma.vmem_to_hbm [thread:$0]  %s448_s26, 512, %s865_s7, [#allocation4], %s774_s27, %s774_s27, %s775_s28  }
 0x2ba   :  { %771 = dma.done.wait [#allocation4], 512  }
 0x2bb   :  { %772 = vsyncadd [#allocation4], 4294966784 }
 0x2bc   :  { %457 = vsyncpa [#allocation3], 1 }
 0x2bd   :  { %458 = vsyncpa [#allocation6], 1 }
 0x2be   :  { %459 = vsyncpa [#allocation9], 1 }
 0x2bf   :  { %460 = vsyncpa [#allocation4], 1 }

</bundles_post_ra>
